<compile_context>
chip_gen: v7x
topology: tpu7x:2x2x1
jax: 0.10.0
libtpu: 0.0.40
codegen_flags: <defaults>
</compile_context>

<pallas_src>
import numpy as np
import jax
import jax.numpy as jnp
from jax.experimental import pallas as pl
from jax.experimental.pallas import tpu as pltpu

N_QUBITS = 4
N_LAYERS = 2
DIM = 1 << N_QUBITS      # 16-dim statevector
HID = 64                 # fc1 width


# ---------------------------------------------------------------------------
# Pallas kernel: fc1 -> relu -> fc2 -> relu -> exact 4-qubit circuit -> fc3
# ---------------------------------------------------------------------------
def qrdqn_kernel(x_ref, w1b1_ref, w2b2_ref, ent_ref, w3b3_ref, out_ref):
    f32 = jnp.float32
    x = x_ref[...]                                   # (Bt, S)
    S = w1b1_ref.shape[0] - 1
    H = w2b2_ref.shape[0] - 1                        # 64

    # fc1 + relu
    h1 = jnp.dot(x, w1b1_ref[:S, :], preferred_element_type=f32) + w1b1_ref[S:S + 1, :]
    h1 = jnp.maximum(h1, 0.0)                        # (Bt, 64)

    # fc2 + relu -> embedding angles
    ang = jnp.dot(h1, w2b2_ref[:H, :], preferred_element_type=f32) + w2b2_ref[H:H + 1, :]
    ang = jnp.maximum(ang, 0.0)                      # (Bt, 4)

    # AngleEmbedding of |0000>: product state, built on the VPU.
    #   amp_k = mag_k * (-i)^popcount(k);  the phase is folded into ent (host).
    c = jnp.cos(0.5 * ang)                           # (Bt, 4)
    s = jnp.sin(0.5 * ang)
    k_idx = jax.lax.broadcasted_iota(jnp.int32, (1, DIM), 1)      # (1, 16): 0..15
    mag = None
    for q in range(N_QUBITS):                        # wire 0 = MSB (PennyLane)
        bit = ((k_idx >> (N_QUBITS - 1 - q)) & 1).astype(f32)     # (1, 16) 0/1
        factor = c[:, q:q + 1] * (1.0 - bit) + s[:, q:q + 1] * bit
        mag = factor if mag is None else mag * factor             # (Bt, 16)

    # BasicEntanglerLayers (parameters only -> precomputed, phase-folded):
    #   psi_out = mag @ (A + iB)
    a = jnp.dot(mag, ent_ref[:DIM, :], preferred_element_type=f32)
    b = jnp.dot(mag, ent_ref[DIM:2 * DIM, :], preferred_element_type=f32)
    probs = a * a + b * b                            # (Bt, 16)

    # <Z_i> folded into fc3:  out = probs @ (Zsign @ W3) + b3
    out_ref[...] = (jnp.dot(probs, w3b3_ref[:DIM, :], preferred_element_type=f32)
                    + w3b3_ref[DIM:DIM + 1, :])


# ---------------------------------------------------------------------------
# Host-side constant / parameter folding (built once per parameter set)
# ---------------------------------------------------------------------------
_ZSIGN = np.array([[1.0 - 2.0 * ((k >> (N_QUBITS - 1 - i)) & 1) for i in range(N_QUBITS)]
                   for k in range(DIM)], dtype=np.float64)                    # (16, 4)
_PHASE = np.array([(-1j) ** bin(k).count("1") for k in range(DIM)],
                  dtype=np.complex128)                                        # (-i)^popcount


def _entangler_matrix(qp):
    """Row-vector-convention matrix of BasicEntanglerLayers (RX + CNOT ring)."""
    qp = np.asarray(qp, np.float64)
    M = np.eye(DIM, dtype=np.complex128)
    for l in range(N_LAYERS):
        for q in range(N_QUBITS):
            mask = 1 << (N_QUBITS - 1 - q)
            c, s = np.cos(qp[l, q] / 2.0), np.sin(qp[l, q] / 2.0)
            R = np.zeros((DIM, DIM), np.complex128)
            for k in range(DIM):
                R[k, k] += c
                R[k ^ mask, k] += -1j * s
            M = M @ R
        for q in range(N_QUBITS):
            ctrl, tgt = q, (q + 1) % N_QUBITS
            C = np.zeros((DIM, DIM), np.complex128)
            for k in range(DIM):
                j = k ^ (((k >> (N_QUBITS - 1 - ctrl)) & 1) << (N_QUBITS - 1 - tgt))
                C[j, k] = 1.0
            M = M @ C
    return M


def prepare_params(params):
    """Pack / fold model parameters once (outside pallas_call)."""
    w1, b1, w2, b2, qp, w3, b3 = [np.asarray(p, np.float64) for p in params]
    w1b1 = np.concatenate([w1, b1.reshape(1, -1)], axis=0)            # (S+1, 64)
    w2b2 = np.concatenate([w2, b2.reshape(1, -1)], axis=0)            # (65, 4)
    ent_c = np.diag(_PHASE) @ _entangler_matrix(qp)                   # phase-folded unitary
    ent = np.concatenate([ent_c.real, ent_c.imag], axis=0)            # (32, 16)
    w3b3 = np.concatenate([_ZSIGN @ w3, b3.reshape(1, -1)], axis=0)   # (17, A)
    to = lambda arr: jnp.asarray(arr, jnp.float32)
    return to(w1b1), to(w2b2), to(ent), to(w3b3)


# ---------------------------------------------------------------------------
# pallas_call wrapper (batch-capable)
# ---------------------------------------------------------------------------
def _pick_block_b(batch):
    for cand in (128, 64, 32, 16, 8):
        if batch % cand == 0:
            return cand
    return batch


def _qrdqn_call(x, w1b1, w2b2, ent, w3b3):
    B, S = x.shape
    A = w3b3.shape[1]
    bb = _pick_block_b(B)
    full = lambda arr: pl.BlockSpec(arr.shape, lambda i: (0, 0))
    return pl.pallas_call(
        qrdqn_kernel,
        out_shape=jax.ShapeDtypeStruct((B, A), jnp.float32),
        grid=(B // bb,),
        in_specs=[pl.BlockSpec((bb, S), lambda i: (i, 0)),
                  full(w1b1), full(w2b2), full(ent), full(w3b3)],
        out_specs=pl.BlockSpec((bb, A), lambda i: (i, 0)),
        compiler_params=pltpu.CompilerParams(dimension_semantics=("parallel",)),
    )(x, w1b1, w2b2, ent, w3b3)


def qrdqn_forward(state, packed):
    """Matches the torch module: state.view(1, -1) -> (1, n_actions)."""
    x = jnp.asarray(state, jnp.float32).reshape(1, -1)
    return _qrdqn_call(x, *packed)


def qrdqn_forward_batched(states, packed):
    """(B, state_dim) -> (B, n_actions); same per-row semantics."""
    x = jnp.asarray(states, jnp.float32)
    return _qrdqn_call(x, *packed)


# ---------------------------------------------------------------------------
# Pure numpy reference (exact PennyLane-style statevector sim)
# ---------------------------------------------------------------------------
def reference_forward(state, params):
    w1, b1, w2, b2, qp, w3, b3 = [np.asarray(p, np.float64) for p in params]
    x = np.asarray(state, np.float64).reshape(1, -1)
    h1 = np.maximum(x @ w1 + b1, 0.0)
    ang = np.maximum(h1 @ w2 + b2, 0.0)[0]

    psi = np.zeros(DIM, np.complex128)
    psi[0] = 1.0

    def rx(psi, theta, q):
        mask = 1 << (N_QUBITS - 1 - q)
        c, s = np.cos(theta / 2), np.sin(theta / 2)
        new = np.empty_like(psi)
        for k in range(DIM):
            new[k] = c * psi[k] - 1j * s * psi[k ^ mask]
        return new

    for q in range(N_QUBITS):
        psi = rx(psi, ang[q], q)
    for l in range(N_LAYERS):
        for q in range(N_QUBITS):
            psi = rx(psi, qp[l, q], q)
        for q in range(N_QUBITS):
            ctrl, tgt = q, (q + 1) % N_QUBITS
            new = np.empty_like(psi)
            for k in range(DIM):
                j = k ^ (((k >> (N_QUBITS - 1 - ctrl)) & 1) << (N_QUBITS - 1 - tgt))
                new[k] = psi[j]
            psi = new

    probs = np.abs(psi) ** 2
    z = np.array([np.sum(probs * _ZSIGN[:, i]) for i in range(N_QUBITS)])[None, :]
    return z @ w3 + b3


if __name__ == "__main__":
    state_dim = 16
    n_actions = 4
    batch = 8

    key = jax.random.PRNGKey(0)
    ks = jax.random.split(key, 9)
    w1 = jax.random.normal(ks[0], (state_dim, 64), jnp.float32) * 0.1
    b1 = jax.random.normal(ks[1], (1, 64), jnp.float32) * 0.05
    w2 = jax.random.normal(ks[2], (64, N_QUBITS), jnp.float32) * 0.1
    b2 = jax.random.normal(ks[3], (1, N_QUBITS), jnp.float32) * 0.05
    qparams = jax.random.uniform(ks[4], (N_LAYERS, N_QUBITS), jnp.float32,
                                 minval=0.0, maxval=2.0 * np.pi)
    w3 = jax.random.normal(ks[5], (N_QUBITS, n_actions), jnp.float32) * 0.1
    b3 = jax.random.normal(ks[6], (1, n_actions), jnp.float32) * 0.05
    params = (w1, b1, w2, b2, qparams, w3, b3)

    packed = prepare_params(params)   # once per parameter set, outside pallas_call

    # Module-faithful path (state.view(1, -1))
    state = jax.random.normal(ks[7], (state_dim,), jnp.float32)
    out = jax.block_until_ready(qrdqn_forward(state, packed))
    ref = reference_forward(state, params)
    assert out.shape == (1, n_actions)
    assert np.allclose(np.asarray(out), ref, atol=1e-4, rtol=1e-4), (out, ref)

    # Batched path (fills sublanes; grid over batch, parallel semantics)
    states = jax.random.normal(ks[8], (batch, state_dim), jnp.float32)
    outs = jax.block_until_ready(qrdqn_forward_batched(states, packed))
    refb = np.concatenate([reference_forward(states[i], params) for i in range(batch)],
                          axis=0)
    assert outs.shape == (batch, n_actions)
    assert np.allclose(np.asarray(outs), refb, atol=1e-4, rtol=1e-4), (outs, refb)

    print("KERNEL_OK")
</pallas_src>

<mosaic_0001>
module attributes {stable_mosaic.version = 11 : i64} {
  func.func @qrdqn_kernel(%arg0: i32, %arg1: memref<1x16xf32, #tpu.memory_space<vmem>>, %arg2: memref<17x64xf32, #tpu.memory_space<vmem>>, %arg3: memref<65x4xf32, #tpu.memory_space<vmem>>, %arg4: memref<32x16xf32, #tpu.memory_space<vmem>>, %arg5: memref<17x4xf32, #tpu.memory_space<vmem>>, %arg6: memref<1x4xf32, #tpu.memory_space<vmem>>) attributes {dimension_semantics = [#tpu.dimension_semantics<parallel>], iteration_bounds = array<i64: 1>, scalar_prefetch = 0 : i64, scratch_operands = 0 : i64, tpu.core_type = #tpu.core_type<tc>, window_params = [{transform_indices = @transform_0, window_bounds = array<i64: 1, 16>}, {pipeline_mode = #tpu.pipeline_mode<synchronous>, transform_indices = @transform_1, window_bounds = array<i64: 17, 64>}, {pipeline_mode = #tpu.pipeline_mode<synchronous>, transform_indices = @transform_2, window_bounds = array<i64: 65, 4>}, {pipeline_mode = #tpu.pipeline_mode<synchronous>, transform_indices = @transform_3, window_bounds = array<i64: 32, 16>}, {pipeline_mode = #tpu.pipeline_mode<synchronous>, transform_indices = @transform_4, window_bounds = array<i64: 17, 4>}, {transform_indices = @transform_5, window_bounds = array<i64: 1, 4>}]} {
    %c0 = arith.constant 0 : index
    %c0_0 = arith.constant 0 : index
    %0 = vector.load %arg1[%c0, %c0_0] : memref<1x16xf32, #tpu.memory_space<vmem>>, vector<1x16xf32>
    %c0_1 = arith.constant 0 : index
    %c0_2 = arith.constant 0 : index
    %1 = vector.load %arg2[%c0_1, %c0_2] : memref<17x64xf32, #tpu.memory_space<vmem>>, vector<16x64xf32>
    %cst = arith.constant dense<0.000000e+00> : vector<1x64xf32>
    %2 = tpu.matmul %0, %1, %cst {dimension_numbers = #tpu.dot_dimension_numbers<[1], [0], [0], [1], [0, 0, 1, 1], [], []>} : vector<1x16xf32>, vector<16x64xf32>, vector<1x64xf32> -> vector<1x64xf32>
    %c16 = arith.constant 16 : index
    %c0_3 = arith.constant 0 : index
    %3 = vector.load %arg2[%c16, %c0_3] : memref<17x64xf32, #tpu.memory_space<vmem>>, vector<1x64xf32>
    %4 = arith.addf %2, %3 : vector<1x64xf32>
    %cst_4 = arith.constant 0.000000e+00 : f32
    %5 = vector.broadcast %cst_4 : f32 to vector<1x64xf32>
    %6 = arith.maximumf %4, %5 : vector<1x64xf32>
    %c0_5 = arith.constant 0 : index
    %c0_6 = arith.constant 0 : index
    %7 = vector.load %arg3[%c0_5, %c0_6] : memref<65x4xf32, #tpu.memory_space<vmem>>, vector<64x4xf32>
    %cst_7 = arith.constant dense<0.000000e+00> : vector<1x4xf32>
    %8 = tpu.matmul %6, %7, %cst_7 {dimension_numbers = #tpu.dot_dimension_numbers<[1], [0], [0], [1], [0, 0, 1, 1], [], []>} : vector<1x64xf32>, vector<64x4xf32>, vector<1x4xf32> -> vector<1x4xf32>
    %c64 = arith.constant 64 : index
    %c0_8 = arith.constant 0 : index
    %9 = vector.load %arg3[%c64, %c0_8] : memref<65x4xf32, #tpu.memory_space<vmem>>, vector<1x4xf32>
    %10 = arith.addf %8, %9 : vector<1x4xf32>
    %cst_9 = arith.constant 0.000000e+00 : f32
    %11 = vector.broadcast %cst_9 : f32 to vector<1x4xf32>
    %12 = arith.maximumf %10, %11 : vector<1x4xf32>
    %cst_10 = arith.constant 5.000000e-01 : f32
    %13 = vector.broadcast %cst_10 : f32 to vector<1x4xf32>
    %14 = arith.mulf %13, %12 : vector<1x4xf32>
    %15 = math.cos %14 : vector<1x4xf32>
    %cst_11 = arith.constant 5.000000e-01 : f32
    %16 = vector.broadcast %cst_11 : f32 to vector<1x4xf32>
    %17 = arith.mulf %16, %12 : vector<1x4xf32>
    %18 = math.sin %17 : vector<1x4xf32>
    %19 = tpu.iota {dimensions = array<i32: 1>} : vector<1x16xi32>
    %c3_i32 = arith.constant 3 : i32
    %20 = vector.broadcast %c3_i32 : i32 to vector<1x16xi32>
    %21 = arith.shrsi %19, %20 : vector<1x16xi32>
    %c1_i32 = arith.constant 1 : i32
    %22 = vector.broadcast %c1_i32 : i32 to vector<1x16xi32>
    %23 = arith.andi %21, %22 : vector<1x16xi32>
    %24 = arith.sitofp %23 : vector<1x16xi32> to vector<1x16xf32>
    %25 = vector.extract_strided_slice %15 {offsets = [0, 0], sizes = [1, 1], strides = [1, 1]} : vector<1x4xf32> to vector<1x1xf32>
    %cst_12 = arith.constant 1.000000e+00 : f32
    %26 = vector.broadcast %cst_12 : f32 to vector<1x16xf32>
    %27 = arith.subf %26, %24 : vector<1x16xf32>
    %28 = vector.broadcast %25 : vector<1x1xf32> to vector<1x16xf32>
    %29 = arith.mulf %28, %27 : vector<1x16xf32>
    %30 = vector.extract_strided_slice %18 {offsets = [0, 0], sizes = [1, 1], strides = [1, 1]} : vector<1x4xf32> to vector<1x1xf32>
    %31 = vector.broadcast %30 : vector<1x1xf32> to vector<1x16xf32>
    %32 = arith.mulf %31, %24 : vector<1x16xf32>
    %33 = arith.addf %29, %32 : vector<1x16xf32>
    %c2_i32 = arith.constant 2 : i32
    %34 = vector.broadcast %c2_i32 : i32 to vector<1x16xi32>
    %35 = arith.shrsi %19, %34 : vector<1x16xi32>
    %c1_i32_13 = arith.constant 1 : i32
    %36 = vector.broadcast %c1_i32_13 : i32 to vector<1x16xi32>
    %37 = arith.andi %35, %36 : vector<1x16xi32>
    %38 = arith.sitofp %37 : vector<1x16xi32> to vector<1x16xf32>
    %39 = vector.extract_strided_slice %15 {offsets = [0, 1], sizes = [1, 1], strides = [1, 1]} : vector<1x4xf32> to vector<1x1xf32>
    %cst_14 = arith.constant 1.000000e+00 : f32
    %40 = vector.broadcast %cst_14 : f32 to vector<1x16xf32>
    %41 = arith.subf %40, %38 : vector<1x16xf32>
    %42 = vector.broadcast %39 : vector<1x1xf32> to vector<1x16xf32>
    %43 = arith.mulf %42, %41 : vector<1x16xf32>
    %44 = vector.extract_strided_slice %18 {offsets = [0, 1], sizes = [1, 1], strides = [1, 1]} : vector<1x4xf32> to vector<1x1xf32>
    %45 = vector.broadcast %44 : vector<1x1xf32> to vector<1x16xf32>
    %46 = arith.mulf %45, %38 : vector<1x16xf32>
    %47 = arith.addf %43, %46 : vector<1x16xf32>
    %48 = arith.mulf %33, %47 : vector<1x16xf32>
    %c1_i32_15 = arith.constant 1 : i32
    %49 = vector.broadcast %c1_i32_15 : i32 to vector<1x16xi32>
    %50 = arith.shrsi %19, %49 : vector<1x16xi32>
    %c1_i32_16 = arith.constant 1 : i32
    %51 = vector.broadcast %c1_i32_16 : i32 to vector<1x16xi32>
    %52 = arith.andi %50, %51 : vector<1x16xi32>
    %53 = arith.sitofp %52 : vector<1x16xi32> to vector<1x16xf32>
    %54 = vector.extract_strided_slice %15 {offsets = [0, 2], sizes = [1, 1], strides = [1, 1]} : vector<1x4xf32> to vector<1x1xf32>
    %cst_17 = arith.constant 1.000000e+00 : f32
    %55 = vector.broadcast %cst_17 : f32 to vector<1x16xf32>
    %56 = arith.subf %55, %53 : vector<1x16xf32>
    %57 = vector.broadcast %54 : vector<1x1xf32> to vector<1x16xf32>
    %58 = arith.mulf %57, %56 : vector<1x16xf32>
    %59 = vector.extract_strided_slice %18 {offsets = [0, 2], sizes = [1, 1], strides = [1, 1]} : vector<1x4xf32> to vector<1x1xf32>
    %60 = vector.broadcast %59 : vector<1x1xf32> to vector<1x16xf32>
    %61 = arith.mulf %60, %53 : vector<1x16xf32>
    %62 = arith.addf %58, %61 : vector<1x16xf32>
    %63 = arith.mulf %48, %62 : vector<1x16xf32>
    %c0_i32 = arith.constant 0 : i32
    %64 = vector.broadcast %c0_i32 : i32 to vector<1x16xi32>
    %65 = arith.shrsi %19, %64 : vector<1x16xi32>
    %c1_i32_18 = arith.constant 1 : i32
    %66 = vector.broadcast %c1_i32_18 : i32 to vector<1x16xi32>
    %67 = arith.andi %65, %66 : vector<1x16xi32>
    %68 = arith.sitofp %67 : vector<1x16xi32> to vector<1x16xf32>
    %69 = vector.extract_strided_slice %15 {offsets = [0, 3], sizes = [1, 1], strides = [1, 1]} : vector<1x4xf32> to vector<1x1xf32>
    %cst_19 = arith.constant 1.000000e+00 : f32
    %70 = vector.broadcast %cst_19 : f32 to vector<1x16xf32>
    %71 = arith.subf %70, %68 : vector<1x16xf32>
    %72 = vector.broadcast %69 : vector<1x1xf32> to vector<1x16xf32>
    %73 = arith.mulf %72, %71 : vector<1x16xf32>
    %74 = vector.extract_strided_slice %18 {offsets = [0, 3], sizes = [1, 1], strides = [1, 1]} : vector<1x4xf32> to vector<1x1xf32>
    %75 = vector.broadcast %74 : vector<1x1xf32> to vector<1x16xf32>
    %76 = arith.mulf %75, %68 : vector<1x16xf32>
    %77 = arith.addf %73, %76 : vector<1x16xf32>
    %78 = arith.mulf %63, %77 : vector<1x16xf32>
    %c0_20 = arith.constant 0 : index
    %c0_21 = arith.constant 0 : index
    %79 = vector.load %arg4[%c0_20, %c0_21] : memref<32x16xf32, #tpu.memory_space<vmem>>, vector<16x16xf32>
    %cst_22 = arith.constant dense<0.000000e+00> : vector<1x16xf32>
    %80 = tpu.matmul %78, %79, %cst_22 {dimension_numbers = #tpu.dot_dimension_numbers<[1], [0], [0], [1], [0, 0, 1, 1], [], []>} : vector<1x16xf32>, vector<16x16xf32>, vector<1x16xf32> -> vector<1x16xf32>
    %c16_23 = arith.constant 16 : index
    %c0_24 = arith.constant 0 : index
    %81 = vector.load %arg4[%c16_23, %c0_24] : memref<32x16xf32, #tpu.memory_space<vmem>>, vector<16x16xf32>
    %cst_25 = arith.constant dense<0.000000e+00> : vector<1x16xf32>
    %82 = tpu.matmul %78, %81, %cst_25 {dimension_numbers = #tpu.dot_dimension_numbers<[1], [0], [0], [1], [0, 0, 1, 1], [], []>} : vector<1x16xf32>, vector<16x16xf32>, vector<1x16xf32> -> vector<1x16xf32>
    %83 = arith.mulf %80, %80 : vector<1x16xf32>
    %84 = arith.mulf %82, %82 : vector<1x16xf32>
    %85 = arith.addf %83, %84 : vector<1x16xf32>
    %c0_26 = arith.constant 0 : index
    %c0_27 = arith.constant 0 : index
    %86 = vector.load %arg5[%c0_26, %c0_27] : memref<17x4xf32, #tpu.memory_space<vmem>>, vector<16x4xf32>
    %cst_28 = arith.constant dense<0.000000e+00> : vector<1x4xf32>
    %87 = tpu.matmul %85, %86, %cst_28 {dimension_numbers = #tpu.dot_dimension_numbers<[1], [0], [0], [1], [0, 0, 1, 1], [], []>} : vector<1x16xf32>, vector<16x4xf32>, vector<1x4xf32> -> vector<1x4xf32>
    %c16_29 = arith.constant 16 : index
    %c0_30 = arith.constant 0 : index
    %88 = vector.load %arg5[%c16_29, %c0_30] : memref<17x4xf32, #tpu.memory_space<vmem>>, vector<1x4xf32>
    %89 = arith.addf %87, %88 : vector<1x4xf32>
    %c0_31 = arith.constant 0 : index
    %c0_32 = arith.constant 0 : index
    %90 = vector.load %arg6[%c0_31, %c0_32] : memref<1x4xf32, #tpu.memory_space<vmem>>, vector<1x4xf32>
    tpu.vector_store %arg6[%c0_31, %c0_32], %89 {strides = array<i32>} : memref<1x4xf32, #tpu.memory_space<vmem>>, vector<1x4xf32>,
    return
  }
  func.func @transform_0(%arg0: i32) -> (i32, i32) {
    %c0_i32 = arith.constant 0 : i32
    %c0_i32_0 = arith.constant 0 : i32
    return %arg0, %c0_i32 : i32, i32
  }
  func.func @transform_1(%arg0: i32) -> (i32, i32) {
    %c0_i32 = arith.constant 0 : i32
    %c0_i32_0 = arith.constant 0 : i32
    %c0_i32_1 = arith.constant 0 : i32
    return %c0_i32, %c0_i32_0 : i32, i32
  }
  func.func @transform_2(%arg0: i32) -> (i32, i32) {
    %c0_i32 = arith.constant 0 : i32
    %c0_i32_0 = arith.constant 0 : i32
    %c0_i32_1 = arith.constant 0 : i32
    return %c0_i32, %c0_i32_0 : i32, i32
  }
  func.func @transform_3(%arg0: i32) -> (i32, i32) {
    %c0_i32 = arith.constant 0 : i32
    %c0_i32_0 = arith.constant 0 : i32
    %c0_i32_1 = arith.constant 0 : i32
    return %c0_i32, %c0_i32_0 : i32, i32
  }
  func.func @transform_4(%arg0: i32) -> (i32, i32) {
    %c0_i32 = arith.constant 0 : i32
    %c0_i32_0 = arith.constant 0 : i32
    %c0_i32_1 = arith.constant 0 : i32
    return %c0_i32, %c0_i32_0 : i32, i32
  }
  func.func @transform_5(%arg0: i32) -> (i32, i32) {
    %c0_i32 = arith.constant 0 : i32
    %c0_i32_0 = arith.constant 0 : i32
    return %arg0, %c0_i32 : i32, i32
  }
}

</mosaic_0001>

<bundles_post_ra>
// kernel: tpu_custom_call.1
= control target key start
LH: loop header
LB: loop body
LE: loop exit
PB: predicated region body
PF: predicated region fallthrough
CT: control target
= control target key end

     0   :  { %v857_v2 = vmov 0.0|0.0   ;;  %vm858_vm0 = vmmov 0   ;;  %v859_v4 = vmov 0.0   ;;  %vm25_vm1 = vcmask 130048   ;;  %s1016_s0 = inlined_call_operand.vmem [shape: f32[1,16], index: 0, kind: input, shape index: {}]   ;;  %s1017_s1 = inlined_call_operand.vmem [shape: f32[17,64], index: 1, kind: input, shape index: {}]   ;;  %s1018_s2 = inlined_call_operand.vmem [shape: f32[65,4], index: 2, kind: input, shape index: {}]   ;;  %s1019_s3 = inlined_call_operand.vmem [shape: f32[32,16], index: 3, kind: input, shape index: {}]   ;;  %s1020_s4 = inlined_call_operand.vmem [shape: f32[17,4], index: 4, kind: input, shape index: {}]   ;;  %s1021_s5 = inlined_call_operand.hbm [shape: f32[1,4], index: 5, kind: output, shape index: {}]  }
   0x1   :  { %v22_v0 = vld [vmem:[%s1017_s1] sm:$0xff]  ;;  %v23_v1 = vld [vmem:[%s1017_s1 + $0x8] sm:$0xff]  ;;  %781 = vmatprep.subr.bf16.mxu0 %v857_v2  ;;  %738 = vmatprep.mubr.msk.f32.mxu0 %vm858_vm0, %v859_v4  ;;  %v102_v8 = vld [vmem:[%s1018_s2 + $0x10] sm:$0xff] }
   0x2   :  { %v782_v3 = vpack.c.bf16 %v23_v1, %v22_v0  ;;  %v100_v5 = vld [vmem:[%s1018_s2] sm:$0xff]  ;;  %v101_v6 = vld [vmem:[%s1018_s2 + $0x8] sm:$0xff]  ;;  %784 = vmatprep.subr.bf16.mxu1 %v857_v2  ;;  %v103_v9 = vld [vmem:[%s1018_s2 + $0x18] sm:$0xff]  ;;  %757 = vmatprep.mubr.msk.f32.mxu1 %vm858_vm0, %v859_v4 }
   0x3   :  { %v785_v7 = vpack.c.bf16 %v101_v6, %v100_v5  ;;  %v21_v10 = vld [vmem:[%s1016_s0] sm:$0x1] }
   0x4   :  { %783 = vmatpush3.bf16.msra.mxu0 %v782_v3 }
   0x5   :  { %10 = vsyncpa [#allocation3], 0  ;;  %786 = vmatpush3.bf16.msra.mxu1 %v785_v7  ;;  %v788_v11 = vpack.c.bf16 %v103_v9, %v102_v8  ;;  %796 = vmatprep.subr.bf16.mxu0 %v857_v2  ;;  %v104_v12 = vld [vmem:[%s1018_s2 + $0x20] sm:$0xff]  ;;  %v105_v13 = vld [vmem:[%s1018_s2 + $0x28] sm:$0xff]  ;;  %vm109_vm2 = vcmask 523264   ;;  %v860_v23 = vmov 1  }
   0x6   :  { %787 = vmatprep.subr.bf16.mxu1 %v857_v2  ;;  %v791_v14 = vpack.c.bf16 %v105_v13, %v104_v12  ;;  %v106_v15 = vld [vmem:[%s1018_s2 + $0x30] sm:$0xff]  ;;  %v107_v16 = vld [vmem:[%s1018_s2 + $0x38] sm:$0xff]  ;;  %824 = vset.pattern.permute.xlu1 %v860_v23  ;;  %v861_v24 = vmov 0   ;;  %v108_v25 = vld [vmem:[%s1018_s2 + $0x40] sm:$0x1]  ;;  %s870_s29 = smov [#allocation2]  }
   0x7   :  { %739 = vmatmul.mubr.msk.f32.vlgmr.msra.gmra.mrb[0].mxu0 %vm25_vm1, %v21_v10  ;;  %v794_v17 = vpack.c.bf16 %v107_v16, %v106_v15  ;;  %v24_v18 = vld [vmem:[%s1017_s1 + $0x10] sm:$0x1]  ;;  %823 = vset.pattern.permute.xlu0 %v861_v24  ;;  %v862_v41 = vmov 683565275   ;;  %v863_v43 = vmov 2475754826  }
   0x8   :  { %764 = vmatprep.mubr.msk.f32.mxu0 %vm858_vm0, %v859_v4  ;;  %v864_v46 = vmov 2131351028   ;;  %v865_v49 = vmov 2102212464   ;;  %v866_v52 = vmov 920167782  }
   0x9   :  { %789 = vmatpush3.bf16.msra.mxu1 %v788_v11  ;;  %v867_v55 = vmov 1326507024   ;;  %s692_s30 = sshll.u32 %s870_s29, 4  ;;  %s693_s30 = int_to_ptr.vmem [resolvable:$true] %s692_s30 }
   0xa   :  { %790 = vmatprep.subr.bf16.mxu1 %v857_v2  ;;  %s833_s6 = scalar_lea.vmem %s693_s30, 16  ;;  %s837_s7 = scalar_lea.vmem %s693_s30, 32 }
   0xb   :  { %p834_p0 = scmp.ne.s32.totalorder %s693_s30, %s833_s6  ;;  %p838_p1 = scmp.lt.s32.totalorder %s693_s30, %s693_s30 }
   0xc   :  { %p839_p2 = scmp.lt.s32.totalorder %s837_s7, %s833_s6 }
   0xd   :  { %792 = vmatpush3.bf16.msra.mxu1 %v791_v14 }
   0xe   :  { %793 = vmatprep.subr.bf16.mxu1 %v857_v2  ;;  %p840_p3 = por %p839_p2, %p838_p1 }
  0x10   :  { %p841_p4 = pnand %p840_p3, %p834_p0 }
  0x11   :  { %795 = vmatpush3.bf16.msra.mxu1 %v794_v17 }
  0xda   :  { %v95_v19 = vpop.f32.mrb[0].mxu0 }
  0xdb   :  { %v96_v20 = vadd.f32 %v95_v19, %v24_v18  ;;  %v740_v21 = vpop.f32.mrb[1].mxu0 }
  0xdd   :  { %v99_v22 = vmax.f32 %v96_v20, 0.0 }
  0xdf   :  { %758 = vmatmul.mubr.msk.f32.vlgmr.msra.gmra.mrb[0].mxu1 %vm109_vm2, %v99_v22 }
 0x1b2   :  { %v179_v26 = vpop.f32.mrb[0].mxu1 }
 0x1b3   :  { %v180_v27 = vadd.f32 %v179_v26, %v108_v25  ;;  %v759_v28 = vpop.f32.mrb[1].mxu1 }
 0x1b5   :  { %v183_v29 = vmax.f32 %v180_v27, 0.0 }
 0x1b7   :  { %v953_v30 = vmul.f32 0.5, %v183_v29 }
 0x1b9   :  { %v188_v31 = vand.u32 2139095040, %v953_v30  ;;  %v185_v35 = vand.u32 2147483647, %v953_v30  ;;  %vm187_vm10 = vcmp.lt.s32.totalorder %v953_v30, 0 }
 0x1bb   :  { %v189_v32 = vshrl.u32 %v188_v31, 23  ;;  %v192_v38 = vand.u32 8388607, %v185_v35  ;;  %vm186_vm11 = vcmp.le.f32.partialorder %v185_v35, 0.7853982 }
 0x1bd   :  { %v702_v33 = vadd.s32 4294967169, %v189_v32  ;;  %v193_v57 = vor.u32 8388608, %v192_v38 }
 0x1bf   :  { %v195_v34 = vadd.s32 1, %v702_v33  ;;  %v233_v9 = vshll.u32 %v193_v57, 8 }
 0x1c1   :  { %vm196_vm3 = vcmp.gt.s32.totalorder %v195_v34, 0 }
 0x1c2   :  { %v197_v36 = vsel %vm196_vm3, %v195_v34, 0 }
 0x1c3   :  { %v199_v37 = vand.u32 31, %v197_v36  ;;  %v198_v40 = vshrl.u32 %v197_v36, 5 }
 0x1c5   :  { %v200_v39 = vsub.s32 32, %v199_v37  ;;  %v202_v42 = vshll.u32 %v862_v41, %v199_v37  ;;  %v205_v44 = vshll.u32 %v863_v43, %v199_v37  ;;  %v208_v48 = vshll.u32 %v864_v46, %v199_v37 }
 0x1c6   :  { %v211_v51 = vshll.u32 %v865_v49, %v199_v37  ;;  %v214_v54 = vshll.u32 %v866_v52, %v199_v37  ;;  %vm217_vm4 = vcmp.lt.s32.totalorder %v198_v40, 1  ;;  %vm220_vm5 = vcmp.lt.s32.totalorder %v198_v40, 4 }
 0x1c7   :  { %v203_v45 = vshrl.u32 %v863_v43, %v200_v39  ;;  %v206_v47 = vshrl.u32 %v864_v46, %v200_v39  ;;  %v209_v50 = vshrl.u32 %v865_v49, %v200_v39  ;;  %v212_v53 = vshrl.u32 %v866_v52, %v200_v39 }
 0x1c8   :  { %v215_v56 = vshrl.u32 %v867_v55, %v200_v39  ;;  %v201_v3 = vshrl.u32 %v862_v41, %v200_v39  ;;  %vm219_vm6 = vcmp.lt.s32.totalorder %v198_v40, 3  ;;  %vm218_vm7 = vcmp.lt.s32.totalorder %v198_v40, 2 }
 0x1c9   :  { %v204_v58 = vor.u32 %v203_v45, %v202_v42  ;;  %v207_v59 = vor.u32 %v206_v47, %v205_v44  ;;  %v210_v60 = vor.u32 %v209_v50, %v208_v48  ;;  %v213_v61 = vor.u32 %v212_v53, %v211_v51 }
 0x1ca   :  { %v216_v62 = vor.u32 %v215_v56, %v214_v54 }
 0x1cb   :  { %v222_v63 = vsel %vm220_vm5, %v210_v60, 2102212464  ;;  %v225_v0 = vsel %vm217_vm4, %v204_v58, %v207_v59  ;;  %v229_v1 = vsel %vm217_vm4, %v207_v59, %v210_v60  ;;  %v226_v5 = vsel %vm220_vm5, %v213_v61, 920167782 }
 0x1cc   :  { %v230_v6 = vsel %vm220_vm5, %v216_v62, 1326507024  ;;  %v227_v7 = vsel %vm219_vm6, %v210_v60, %v226_v5  ;;  %v221_v10 = vsel %vm217_vm4, %v201_v3, %v204_v58  ;;  %v223_v11 = vsel %vm219_vm6, %v207_v59, %v222_v63 }
 0x1cd   :  { %v231_v8 = vsel %vm219_vm6, %v213_v61, %v230_v6  ;;  %v228_v12 = vsel %vm218_vm7, %v225_v0, %v227_v7  ;;  %v224_v18 = vsel %vm218_vm7, %v221_v10, %v223_v11  ;;  %vm277_vm4 = vweird.f32 %v953_v30  ;;  %v459_v6 = vld [vmem:[%s1019_s3 + $0x8] sm:$0xff] }
 0x1ce   :  { %v232_v13 = vsel %vm218_vm7, %v229_v1, %v231_v8  ;;  %v962_v16 = vmul.u32.u64.low %v233_v9, %v228_v12  ;;  %v963_v17 = vmul.u32.u64.high %v233_v9, %v228_v12, %v962_v16  ;;  %v240_v20 = vmul.u32 %v233_v9, %v224_v18 }
 0x1cf   :  { %v959_v14 = vmul.u32.u64.low %v233_v9, %v232_v13  ;;  %v960_v15 = vmul.u32.u64.high %v233_v9, %v232_v13, %v959_v14  ;;  %v868_v3 = vmov 2   ;;  %v869_v5 = vmov 3  }
 0x1d0   :  { %v243_v19 = vadd.s32 1, %v963_v17  ;;  %v392_v8 = vlaneseq }
 0x1d1   :  { %vm242_vm8 = vc.u32 %v960_v15, %v962_v16  ;;  %v241_v33 = vadd.s32 %v962_v16, %v960_v15 }
 0x1d2   :  { %v244_v21 = vsel %vm242_vm8, %v243_v19, %v963_v17  ;;  %v393_v9 = vand.u32 127, %v392_v8 }
 0x1d3   :  { %v245_v22 = vadd.s32 %v244_v21, %v240_v20 }
 0x1d4   :  { %v411_v10 = vshra.s32 %v393_v9, 2  ;;  %v394_v11 = vshra.s32 %v393_v9, 3  ;;  %v427_v12 = vshra.s32 %v393_v9, 1  ;;  %v443_v21 = vand.u32 1, %v393_v9 }
 0x1d5   :  { %v246_v23 = vadd.s32 536870912, %v245_v22 }
 0x1d6   :  { %v412_v13 = vand.u32 1, %v411_v10  ;;  %v395_v14 = vand.u32 1, %v394_v11  ;;  %v428_v15 = vand.u32 1, %v427_v12 }
 0x1d7   :  { %v247_v24 = vshrl.u32 %v246_v23, 30 }
 0x1d8   :  { %v413_v18 = vcvt.s32.f32 %v412_v13  ;;  %v396_v19 = vcvt.s32.f32 %v395_v14  ;;  %v429_v20 = vcvt.s32.f32 %v428_v15 }
 0x1d9   :  { %v248_v25 = vshll.u32 %v247_v24, 30  ;;  %v271_v46 = vsub.s32 4, %v247_v24 }
 0x1db   :  { %v249_v26 = vsub.s32 %v245_v22, %v248_v25  ;;  %v272_v49 = vsel %vm187_vm10, %v271_v46, %v247_v24  ;;  %v414_v24 = vsub.f32 1.0, %v413_v18  ;;  %v397_v25 = vsub.f32 1.0, %v396_v19 }
 0x1dc   :  { %v274_v51 = vsel %vm186_vm11, 0, %v272_v49 }
 0x1dd   :  { %v251_v27 = vsub.s32 0, %v249_v26  ;;  %v381_v52 = vadd.s32 3, %v274_v51  ;;  %v278_v53 = vand.u32 3, %v274_v51 }
 0x1df   :  { %v703_v28 = vmin.u32 %v251_v27, %v249_v26  ;;  %v382_v54 = vand.u32 3, %v381_v52  ;;  %vm283_vm12 = vcmp.eq.s32.totalorder %v278_v53, 2  ;;  %vm280_vm14 = vcmp.eq.s32.totalorder %v278_v53, 0 }
 0x1e0   :  { %vm279_vm2 = vcmp.lt.s32.totalorder %v278_v53, 2  ;;  %v608_v53 = vld [vmem:[%s1020_s4] sm:$0xff] }
 0x1e1   :  { %v253_v29 = vclz %v703_v28  ;;  %vm387_vm13 = vcmp.eq.s32.totalorder %v382_v54, 2  ;;  %vm384_vm15 = vcmp.eq.s32.totalorder %v382_v54, 0  ;;  %vm383_vm3 = vcmp.lt.s32.totalorder %v382_v54, 2  ;;  %v609_v54 = vld [vmem:[%s1020_s4 + $0x8] sm:$0xff] }
 0x1e3   :  { %v704_v31 = vadd.s32 4294967294, %v253_v29  ;;  %v444_v29 = vcvt.s32.f32 %v443_v21 }
 0x1e5   :  { %vm705_vm9 = vcmp.lt.s32.totalorder %v704_v31, 0 }
 0x1e6   :  { %v256_v32 = vsel %vm705_vm9, 0, %v704_v31 }
 0x1e7   :  { %v257_v34 = vsub.s32 32, %v256_v32  ;;  %v261_v36 = vsub.s32 4294967266, %v256_v32  ;;  %v258_v37 = vshll.u32 %v249_v26, %v256_v32  ;;  %v430_v26 = vsub.f32 1.0, %v429_v20 }
 0x1e9   :  { %v259_v38 = vshrl.u32 %v241_v33, %v257_v34  ;;  %v262_v39 = vadd.s32 127, %v261_v36 }
 0x1eb   :  { %v260_v40 = vor.u32 %v259_v38, %v258_v37  ;;  %v263_v41 = vshll.u32 %v262_v39, 23 }
 0x1ed   :  { %v264_v42 = vor.u32 4788187, %v263_v41  ;;  %v267_v44 = vcvt.s32.f32 %v260_v40  ;;  %v445_v40 = vsub.f32 1.0, %v444_v29 }
 0x1ef   :  { %v265_v43 = vand.u32 2147483647, %v264_v42 }
 0x1f1   :  { %v268_v45 = vmul.f32 %v267_v44, %v265_v43 }
 0x1f3   :  { %v269_v47 = vxor.u32 2147483648, %v268_v45 }
 0x1f5   :  { %v270_v48 = vsel %vm187_vm10, %v269_v47, %v268_v45  ;;  %v533_v47 = vld [vmem:[%s1019_s3 + $0x10] sm:$0xff] }
 0x1f6   :  { %v273_v50 = vsel %vm186_vm11, %v953_v30, %v270_v48  ;;  %v458_v30 = vld [vmem:[%s1019_s3] sm:$0xff]  ;;  %v534_v48 = vld [vmem:[%s1019_s3 + $0x18] sm:$0xff] }
 0x1f7   :  { %829 = vcosq.f32 %v273_v50  ;;  %v797_v7 = vpack.c.bf16 %v459_v6, %v458_v30  ;;  %v800_v51 = vpack.c.bf16 %v534_v48, %v533_v47 }
 0x1f8   :  { %831 = vsinq.f32 %v273_v50 }
 0x1f9   :  { %798 = vmatpush3.bf16.msra.mxu0 %v797_v7 }
 0x1fa   :  { %799 = vmatprep.subr.bf16.mxu0 %v857_v2 }
 0x201   :  { %v830_v55 = vpop.eup %829 }
 0x202   :  { %v832_v56 = vpop.eup %831  ;;  %v284_v57 = vxor.u32 2147483648, %v830_v55 }
 0x203   :  { %v281_v58 = vxor.u32 2147483648, %v832_v56 }
 0x204   :  { %v285_v59 = vsel %vm283_vm12, %v284_v57, %v832_v56  ;;  %v389_v60 = vsel %vm387_vm13, %v284_v57, %v832_v56 }
 0x205   :  { %v282_v35 = vsel %vm280_vm14, %v830_v55, %v281_v58  ;;  %v386_v61 = vsel %vm384_vm15, %v830_v55, %v281_v58  ;;  %v803_v55 = vpack.c.bf16 %v609_v54, %v608_v53 }
 0x206   :  { %v286_v62 = vsel %vm279_vm2, %v282_v35, %v285_v59  ;;  %v390_v63 = vsel %vm383_vm3, %v386_v61, %v389_v60 }
 0x207   :  { %v287_v0 = vsel %vm277_vm4, nan, %v286_v62  ;;  %v391_v1 = vsel %vm277_vm4, nan, %v390_v63 }
 0x208   :  { %416 = vperm.xlu1 %824, %v287_v0   ;;  %400 = vperm.xlu0 %823, %v287_v0  }
 0x20c   :  { %421 = vperm.xlu1 %824, %v391_v1   ;;  %406 = vperm.xlu0 %823, %v391_v1  }
 0x210   :  { %826 = vset.pattern.permute.xlu1 %v868_v3  ;;  %825 = vset.pattern.permute.xlu0 %v868_v3 }
 0x211   :  { %437 = vperm.xlu1 %826, %v391_v1   ;;  %432 = vperm.xlu0 %825, %v287_v0  }
 0x215   :  { %827 = vset.pattern.permute.xlu1 %v869_v5  ;;  %828 = vset.pattern.permute.xlu0 %v869_v5 }
 0x216   :  { %447 = vperm.xlu1 %827, %v287_v0   ;;  %452 = vperm.xlu0 %828, %v391_v1  }
 0x287   :  { %v417_v16 = vpop.permute.xlu1 %416  ;;  %v401_v17 = vpop.permute.xlu0 %400 }
 0x288   :  { %v419_v31 = vmul.f32 %v417_v16, %v414_v24  ;;  %v403_v32 = vmul.f32 %v401_v17, %v397_v25 }
 0x28b   :  { %v422_v22 = vpop.permute.xlu1 %421  ;;  %v407_v23 = vpop.permute.xlu0 %406 }
 0x28c   :  { %v424_v27 = vmul.f32 %v422_v22, %v413_v18  ;;  %v409_v28 = vmul.f32 %v407_v23, %v396_v19 }
 0x28e   :  { %v425_v38 = vadd.f32 %v424_v27, %v419_v31  ;;  %v410_v39 = vadd.f32 %v409_v28, %v403_v32 }
 0x290   :  { %v438_v33 = vpop.permute.xlu1 %437  ;;  %v433_v34 = vpop.permute.xlu0 %432  ;;  %v426_v44 = vmul.f32 %v425_v38, %v410_v39 }
 0x291   :  { %v440_v36 = vmul.f32 %v438_v33, %v429_v20  ;;  %v435_v37 = vmul.f32 %v433_v34, %v430_v26 }
 0x293   :  { %v441_v41 = vadd.f32 %v440_v36, %v435_v37 }
 0x295   :  { %v448_v42 = vpop.permute.xlu1 %447  ;;  %v453_v43 = vpop.permute.xlu0 %452  ;;  %v442_v49 = vmul.f32 %v441_v41, %v426_v44 }
 0x296   :  { %v450_v45 = vmul.f32 %v448_v42, %v445_v40  ;;  %v455_v46 = vmul.f32 %v453_v43, %v444_v29 }
 0x298   :  { %v456_v50 = vadd.f32 %v455_v46, %v450_v45 }
 0x29a   :  { %v457_v52 = vmul.f32 %v456_v50, %v442_v49 }
 0x29c   :  { %765 = vmatmul.mubr.msk.f32.vlgmr.msra.gmra.mrb[2].mxu0 %vm25_vm1, %v457_v52 }
 0x29d   :  { %801 = vmatpush3.bf16.msra.mxu0 %v800_v51  ;;  %771 = vmatprep.mubr.msk.f32.mxu0 %vm858_vm0, %v859_v4 }
 0x29e   :  { %802 = vmatprep.subr.bf16.mxu0 %v857_v2 }
 0x2a0   :  { %772 = vmatmul.mubr.msk.f32.vlgmr.msra.gmra.mrb[4].mxu0 %vm25_vm1, %v457_v52 }
 0x2a1   :  { %778 = vmatprep.mubr.msk.f32.mxu0 %vm858_vm0, %v859_v4  ;;  %804 = vmatpush3.bf16.msra.mxu0 %v803_v55  ;;  %v610_v4 = vld [vmem:[%s1020_s4 + $0x10] sm:$0x1]  ;;  %vm684_vm0 = vcmask 24576  }
 0x36f   :  { %v529_v56 = vpop.f32.mrb[2].mxu0 }
 0x370   :  { %v766_v57 = vpop.f32.mrb[3].mxu0  ;;  %v605_v59 = vmul.f32 %v529_v56, %v529_v56 }
 0x373   :  { %v601_v58 = vpop.f32.mrb[4].mxu0 }
 0x374   :  { %v606_v2 = vmul.f32 %v601_v58, %v601_v58  ;;  %v773_v60 = vpop.f32.mrb[5].mxu0 }
 0x376   :  { %v607_v35 = vadd.f32 %v606_v2, %v605_v59 }
 0x378   :  { %779 = vmatmul.mubr.msk.f32.vlgmr.msra.gmra.mrb[6].mxu0 %vm25_vm1, %v607_v35 }
 0x44b   :  { %v680_v61 = vpop.f32.mrb[6].mxu0 }
 0x44c   :  { %v681_v62 = vadd.f32 %v680_v61, %v610_v4  ;;  %v780_v63 = vpop.f32.mrb[7].mxu0 }
 0x44e   :  { %685 = vst.msk [vmem:[#allocation2] sm:$0x1] %vm684_vm0, %v681_v62 }
 0x44f   :  { %844 = shalt.err (!%p841_p4)
}
 0x450   :  { %s845_s4 = scalar_lea.hbm %s1021_s5, 16 }
 0x451   :  { %p846_p5 = scmp.ne.s32.totalorder %s1021_s5, %s845_s4  ;;  %p849_p6 = scmp.lt.u32.totalorder %s845_s4, %s1021_s5 }
 0x453   :  { %p851_p7 = pnand %p849_p6, %p846_p5 }
 0x455   :  { %854 = shalt.err (!%p851_p7)
}
 0x456   :  { %695 = dma.vmem_to_hbm [thread:$0]  %s693_s30, 16, %s1021_s5, [#allocation3]  }
 0x457   :  { %855 = dma.done.wait [#allocation3], 16  }
 0x458   :  { %856 = vsyncadd [#allocation3], 4294967280 }
 0x459   :  { %699 = vsyncpa [#allocation3], 1 }

</bundles_post_ra>
